<compile_context>
chip_gen: v6e
topology: v6e:2x2x1
jax: 0.10.0
libtpu: 0.0.40
codegen_flags: <defaults>
</compile_context>

<pallas_src>
import jax
import jax.numpy as jnp
from jax.experimental import pallas as pl
from jax.experimental.pallas import tpu as pltpu

_LANE = 128
_SUBLANE = 8
# Per-block budget for one x tile.  Input and output blocks are each
# double-buffered, so ~4x this is live in VMEM at once (~8 MiB).
_BLOCK_BUDGET_BYTES = 2 << 20


def _soft_threshold_kernel(x_ref, t_ref, o_ref):
    """Elementwise soft threshold; t_ref is (rows, 1) or (1, lanes) and
    broadcasts over lanes / sublanes respectively (pure VPU)."""
    x = x_ref[...]
    t = t_ref[...]
    zero = jnp.zeros_like(x)
    # Exact PyTorch formula (two strict-inequality masks).  NOT simplified to
    # x - clip(x, -t, t): that is only equivalent for t >= 0, and t is a
    # learnable parameter that may go negative during training.
    o_ref[...] = jnp.where(x > t, x - t, zero) + jnp.where(x < -t, x + t, zero)


def soft_threshold_1d(x, threshold, *, block_budget_bytes=_BLOCK_BUDGET_BYTES):
    """x: (N, C, L), threshold: (1, C, 1). Returns (N, C, L)."""
    N, C, L = x.shape
    assert threshold.shape == (1, C, 1)
    thr = threshold.astype(x.dtype)
    itemsize = jnp.dtype(x.dtype).itemsize
    total = N * C * L

    if L % _LANE == 0:
        # Row view: (N*C, L).  Sublane dim is N*C (good packing even for
        # small batch N), lane dim already a multiple of 128.  Threshold is a
        # tiny per-row column; no expanded-threshold pass.
        R = N * C
        x2 = x.reshape(R, L)
        t2 = jnp.broadcast_to(thr, (N, C, 1)).reshape(R, 1)

        # Lane tile: full L if an 8-row slab of it fits the budget, else a
        # multiple of 128 (partial tail block handled by masking).
        max_lane = max(
            _LANE,
            (block_budget_bytes // (min(R, _SUBLANE) * itemsize))
            // _LANE * _LANE,
        )
        lane_tile = min(L, max_lane)
        # Row tile: fill the remaining budget; multiple of 8 (or full R).
        max_rows = max(
            _SUBLANE,
            (block_budget_bytes // (lane_tile * itemsize))
            // _SUBLANE * _SUBLANE,
        )
        row_tile = R if R <= max_rows else max_rows

        grid = (pl.cdiv(R, row_tile), pl.cdiv(L, lane_tile))
        out2 = pl.pallas_call(
            _soft_threshold_kernel,
            out_shape=jax.ShapeDtypeStruct((R, L), x.dtype),
            grid_spec=pltpu.PrefetchScalarGridSpec(
                num_scalar_prefetch=0,
                grid=grid,
                in_specs=[
                    pl.BlockSpec((row_tile, lane_tile), lambda i, j: (i, j)),
                    pl.BlockSpec((row_tile, 1), lambda i, j: (i, 0)),
                ],
                out_specs=pl.BlockSpec((row_tile, lane_tile),
                                       lambda i, j: (i, j)),
            ),
            compiler_params=pltpu.CompilerParams(
                dimension_semantics=("parallel", "parallel"),
            ),
            cost_estimate=pl.CostEstimate(
                flops=5 * total,
                bytes_accessed=(2 * total + R) * itemsize,
                transcendentals=0,
            ),
        )(x2, t2)
        return out2.reshape(N, C, L)

    # Fallback lane view: (N, C*L) with a (1, C*L) threshold row.
    M = C * L
    x2 = x.reshape(N, M)
    t2 = jnp.broadcast_to(thr, (1, C, L)).reshape(1, M)

    max_lane = max(
        _LANE,
        (block_budget_bytes // (N * itemsize)) // _LANE * _LANE,
    )
    lane_tile = M if M <= max_lane else max_lane

    grid = (pl.cdiv(M, lane_tile),)
    out2 = pl.pallas_call(
        _soft_threshold_kernel,
        out_shape=jax.ShapeDtypeStruct((N, M), x.dtype),
        grid_spec=pltpu.PrefetchScalarGridSpec(
            num_scalar_prefetch=0,
            grid=grid,
            in_specs=[
                pl.BlockSpec((N, lane_tile), lambda j: (0, j)),
                pl.BlockSpec((1, lane_tile), lambda j: (0, j)),
            ],
            out_specs=pl.BlockSpec((N, lane_tile), lambda j: (0, j)),
        ),
        compiler_params=pltpu.CompilerParams(
            dimension_semantics=("parallel",),
        ),
        cost_estimate=pl.CostEstimate(
            flops=5 * total,
            bytes_accessed=(2 * total + M) * itemsize,
            transcendentals=0,
        ),
    )(x2, t2)
    return out2.reshape(N, C, L)


def make_threshold(channel_num, init_threshold=0.001, dtype=jnp.float32):
    # Mirrors nn.Parameter(init_threshold * torch.ones(1, C, 1)).
    return init_threshold * jnp.ones((1, channel_num, 1), dtype=dtype)


def _reference(x, thr):
    mask1 = (x > thr).astype(x.dtype)
    mask2 = (x < -thr).astype(x.dtype)
    return mask1 * (x - thr) + mask2 * (x + thr)


if __name__ == "__main__":
    key = jax.random.PRNGKey(0)
    k1, k2, k3, k4, k5 = jax.random.split(key, 5)

    # Case 1: module-typical small shape (batch=2, channels=4, length=16);
    # exercises the (N, C*L) lane-view fallback (L % 128 != 0).
    x1 = jax.random.normal(k1, (2, 4, 16), dtype=jnp.float32) * 0.01
    t1 = make_threshold(4, init_threshold=0.001)
    o1 = jax.block_until_ready(soft_threshold_1d(x1, t1))
    assert jnp.allclose(o1, _reference(x1, t1), atol=1e-6), "case 1 mismatch"

    # Case 2: row-view path (L % 128 == 0) with mixed-sign thresholds to
    # confirm the exact two-mask semantics (incl. negative thresholds).
    x2 = jax.random.normal(k2, (2, 4, 256), dtype=jnp.float32)
    t2 = 0.05 * jax.random.normal(k3, (1, 4, 1), dtype=jnp.float32)
    o2 = jax.block_until_ready(soft_threshold_1d(x2, t2))
    assert jnp.allclose(o2, _reference(x2, t2), atol=1e-6), "case 2 mismatch"

    # Case 3: tiny block budget forces a multi-step grid with partial tail
    # blocks on BOTH axes of the row view (R=15 rows, L=384 lanes).
    x3 = jax.random.normal(k4, (3, 5, 384), dtype=jnp.float32)
    t3 = 0.05 * jax.random.normal(k5, (1, 5, 1), dtype=jnp.float32)
    o3 = jax.block_until_ready(
        soft_threshold_1d(x3, t3, block_budget_bytes=8 * 1024))
    assert jnp.allclose(o3, _reference(x3, t3), atol=1e-6), "case 3 mismatch"

    # Case 4: partial tail block on the lane-view fallback (M=150, tile=128).
    x4 = jax.random.normal(k1, (2, 3, 50), dtype=jnp.float32)
    t4 = make_threshold(3, init_threshold=0.01)
    o4 = jax.block_until_ready(
        soft_threshold_1d(x4, t4, block_budget_bytes=1024))
    assert jnp.allclose(o4, _reference(x4, t4), atol=1e-6), "case 4 mismatch"

    print("KERNEL_OK")
</pallas_src>

<mosaic_0001>
module attributes {stable_mosaic.version = 11 : i64} {
  func.func @_soft_threshold_kernel(%arg0: i32, %arg1: memref<2x64xf32, #tpu.memory_space<vmem>>, %arg2: memref<1x64xf32, #tpu.memory_space<vmem>>, %arg3: memref<2x64xf32, #tpu.memory_space<vmem>>) attributes {dimension_semantics = [#tpu.dimension_semantics<parallel>], iteration_bounds = array<i64: 1>, scalar_prefetch = 0 : i64, scratch_operands = 0 : i64, tpu.core_type = #tpu.core_type<tc>, window_params = [{transform_indices = @transform_0, window_bounds = array<i64: 2, 64>}, {transform_indices = @transform_1, window_bounds = array<i64: 1, 64>}, {transform_indices = @transform_2, window_bounds = array<i64: 2, 64>}]} {
    %c0 = arith.constant 0 : index
    %c0_0 = arith.constant 0 : index
    %0 = vector.load %arg1[%c0, %c0_0] : memref<2x64xf32, #tpu.memory_space<vmem>>, vector<2x64xf32>
    %c0_1 = arith.constant 0 : index
    %c0_2 = arith.constant 0 : index
    %1 = vector.load %arg2[%c0_1, %c0_2] : memref<1x64xf32, #tpu.memory_space<vmem>>, vector<1x64xf32>
    %cst = arith.constant 0.000000e+00 : f32
    %2 = vector.broadcast %cst : f32 to vector<2x64xf32>
    %3 = vector.broadcast %1 : vector<1x64xf32> to vector<2x64xf32>
    %4 = arith.cmpf ogt, %0, %3 : vector<2x64xf32>
    %5 = vector.broadcast %1 : vector<1x64xf32> to vector<2x64xf32>
    %6 = arith.subf %0, %5 : vector<2x64xf32>
    %7 = arith.select %4, %6, %2 : vector<2x64xi1>, vector<2x64xf32>
    %cst_3 = arith.constant 0.000000e+00 : f32
    %8 = vector.broadcast %cst_3 : f32 to vector<1x64xf32>
    %9 = arith.subf %8, %1 : vector<1x64xf32>
    %10 = vector.broadcast %9 : vector<1x64xf32> to vector<2x64xf32>
    %11 = arith.cmpf olt, %0, %10 : vector<2x64xf32>
    %12 = vector.broadcast %1 : vector<1x64xf32> to vector<2x64xf32>
    %13 = arith.addf %0, %12 : vector<2x64xf32>
    %14 = arith.select %11, %13, %2 : vector<2x64xi1>, vector<2x64xf32>
    %15 = arith.addf %7, %14 : vector<2x64xf32>
    %c0_4 = arith.constant 0 : index
    %c0_5 = arith.constant 0 : index
    %16 = vector.load %arg3[%c0_4, %c0_5] : memref<2x64xf32, #tpu.memory_space<vmem>>, vector<2x64xf32>
    tpu.vector_store %arg3[%c0_4, %c0_5], %15 {strides = array<i32>} : memref<2x64xf32, #tpu.memory_space<vmem>>, vector<2x64xf32>,
    return
  }
  func.func @transform_0(%arg0: i32) -> (i32, i32) {
    %c0_i32 = arith.constant 0 : i32
    %c0_i32_0 = arith.constant 0 : i32
    return %c0_i32, %arg0 : i32, i32
  }
  func.func @transform_1(%arg0: i32) -> (i32, i32) {
    %c0_i32 = arith.constant 0 : i32
    %c0_i32_0 = arith.constant 0 : i32
    return %c0_i32, %arg0 : i32, i32
  }
  func.func @transform_2(%arg0: i32) -> (i32, i32) {
    %c0_i32 = arith.constant 0 : i32
    %c0_i32_0 = arith.constant 0 : i32
    return %c0_i32, %arg0 : i32, i32
  }
}

</mosaic_0001>

<bundles_post_ra>
// kernel: tpu_custom_call.1
= control target key start
LH: loop header
LB: loop body
LE: loop exit
PB: predicated region body
PF: predicated region fallthrough
CT: control target
= control target key end

     0   :  { %7 = vsyncpa [#allocation3], 0  ;;  %s135_s0 = inlined_call_operand.hbm [shape: f32[2,64], index: 0, kind: input, shape index: {}]   ;;  %s136_s1 = inlined_call_operand.vmem [shape: f32[1,64], index: 1, kind: input, shape index: {}]   ;;  %s137_s2 = inlined_call_operand.hbm [shape: f32[2,64], index: 2, kind: output, shape index: {}]  }
   0x1   :  { %8 = vsyncpa [#allocation4], 0  ;;  %s109_s9 = smov [#allocation2]  }
   0x2   :  { %s15_s10 = sshll.u32 %s109_s9, 4  ;;  %s16_s10 = int_to_ptr.vmem [resolvable:$true] %s15_s10 }
   0x3   :  { %s73_s11 = scalar_lea.vmem %s16_s10, 32  ;;  %p78_p1 = scmp.lt.s32.totalorder %s16_s10, %s16_s10 }
   0x4   :  { %p74_p0 = scmp.ne.s32.totalorder %s16_s10, %s73_s11  ;;  %p79_p2 = scmp.lt.s32.totalorder %s73_s11, %s73_s11 }
   0x6   :  { %p80_p3 = por %p79_p2, %p78_p1 }
   0x8   :  { %p81_p4 = pnand %p80_p3, %p74_p0 }
   0xa   :  { %84 = shalt.err (!%p81_p4)
}
   0xb   :  { %18 = dma.hbm_to_vmem [thread:$0]  %s135_s0, 32, %s16_s10, [#allocation3]  }
   0xc   :  { %105 = dma.done.wait [#allocation3], 32  }
   0xd   :  { %106 = vsyncadd [#allocation3], 4294967264  ;;  %v27_v0 = vlaneseq  ;;  %v24_v3 = vld [vmem:[#allocation2] sm:$0x3]  ;;  %s110_s16 = smov [#allocation5]   ;;  %vm46_vm2 = vcmask 517120  }
   0xe   :  { %v25_v4 = vld [vmem:[%s136_s1] sm:$0x1]  ;;  %s54_s17 = sshll.u32 %s110_s16, 4  ;;  %s55_s17 = int_to_ptr.vmem [resolvable:$true] %s54_s17 }
   0xf   :  { %v28_v1 = vshrl.u32 %v27_v0, 7  ;;  %v35_v6 = vsub.f32 0.0, %v25_v4  ;;  %s85_s0 = scalar_lea.vmem %s55_s17, 32  ;;  %p90_p6 = scmp.lt.s32.totalorder %s55_s17, %s55_s17 }
  0x10   :  { %p86_p5 = scmp.ne.s32.totalorder %s55_s17, %s85_s0  ;;  %p91_p7 = scmp.lt.s32.totalorder %s85_s0, %s85_s0 }
  0x11   :  { %v29_v2 = vsub.s32 0, %v28_v1 }
  0x12   :  { %p92_p8 = por %p91_p7, %p90_p6 }
  0x13   :  { %v30_v5 = vrot.slane %v25_v4, %v29_v2  ;;  %v40_v8 = vrot.slane %v35_v6, %v29_v2 }
  0x14   :  { %p93_p9 = pnand %p92_p8, %p86_p5 }
  0x15   :  { %vm32_vm0 = vcmp.gt.f32.partialorder %v24_v3, %v30_v5  ;;  %v33_v7 = vsub.f32 %v24_v3, %v30_v5  ;;  %v43_v9 = vadd.f32 %v30_v5, %v24_v3  ;;  %vm42_vm1 = vcmp.lt.f32.partialorder %v24_v3, %v40_v8 }
  0x17   :  { %v34_v10 = vsel %vm32_vm0, %v33_v7, 0.0  ;;  %v44_v11 = vsel %vm42_vm1, %v43_v9, 0.0 }
  0x18   :  { %v45_v12 = vadd.f32 %v44_v11, %v34_v10 }
  0x1a   :  { %47 = vst.msk [vmem:[#allocation5] sm:$0x3] %vm46_vm2, %v45_v12 }
  0x1b   :  { %96 = shalt.err (!%p93_p9)
}
  0x1c   :  { %57 = dma.vmem_to_hbm [thread:$0]  %s55_s17, 32, %s137_s2, [#allocation4]  }
  0x1d   :  { %107 = dma.done.wait [#allocation4], 32  }
  0x1e   :  { %108 = vsyncadd [#allocation4], 4294967264 }
  0x1f   :  { %61 = vsyncpa [#allocation3], 1 }
  0x20   :  { %62 = vsyncpa [#allocation4], 1 }

</bundles_post_ra>
